<compile_context>
chip_gen: v5e
topology: v5e:2x2
jax: 0.10.0
libtpu: 0.0.40
codegen_flags: <defaults>
</compile_context>

<pallas_src>
import functools
import math

import jax
import jax.numpy as jnp
from jax import lax
from jax.experimental import pallas as pl
from jax.experimental.pallas import tpu as pltpu


def _blitm_kernel(T, Bp, H2, Vp,
                  ids_ref, tbl_ref, wih_ref, b_ref, whh_ref, wo_ref, bo_ref,
                  out_ref):
    """Fused embed -> BiLSTM -> hidden2tag; everything VMEM-resident, no grid.

    ids_ref : [T*Bp, 2]    int32  (token id at time t | token id at time T-1-t)
    tbl_ref : [Vp, E]      bf16   embedding table (vocab zero-padded)
    wih_ref : [2*E, 8*H2]  bf16   input->gate block weights, gate columns
                                  [i_f,i_b, f_f,f_b, o_f,o_b, g_f,g_b]
    b_ref   : [1, 8*H2]    f32    (b_ih + b_hh), same gate-column order
    whh_ref : [2*H2, 8*H2] bf16   recurrent block weights, same column order
    wo_ref  : [2*H2, Cp]   bf16   hidden2tag weights (classes lane-padded)
    bo_ref  : [1, Cp]      f32
    out_ref : [T*Bp, Cp]   f32    emissions, time-major rows, lane-padded
    """
    TB = T * Bp

    # ---- (1) in-kernel embedding gather via one-hot @ table (MXU) ----------
    ids = ids_ref[...]                                         # [TB, 2] int32
    viota = lax.broadcasted_iota(jnp.int32, (TB, Vp), 1)
    oh_f = jnp.where(ids[:, 0:1] == viota, 1.0, 0.0).astype(jnp.bfloat16)
    oh_b = jnp.where(ids[:, 1:2] == viota, 1.0, 0.0).astype(jnp.bfloat16)
    tbl = tbl_ref[...]
    x_f = jnp.dot(oh_f, tbl, preferred_element_type=jnp.float32)   # emb(t)
    x_b = jnp.dot(oh_b, tbl, preferred_element_type=jnp.float32)   # emb(T-1-t)
    x_cat = jnp.concatenate([x_f, x_b], axis=1).astype(jnp.bfloat16)  # [TB, 2E]

    # ---- (2) bulk input projection for BOTH directions (+ folded biases) ---
    gates_x = (jnp.dot(x_cat, wih_ref[...], preferred_element_type=jnp.float32)
               + b_ref[...])                                   # [TB, 8*H2] f32

    whh = whh_ref[...]                                         # loop-invariant
    S = 6 * H2                                                 # sigmoid width

    h_cat = jnp.zeros((Bp, 2 * H2), jnp.float32)               # [hf | hb]
    c_cat = jnp.zeros((Bp, 2 * H2), jnp.float32)               # [cf | cb]
    hfs = [None] * T
    hbs = [None] * T

    # ---- (3) fused fwd/bwd recurrence, statically unrolled ------------------
    # Per step: ONE MXU matmul (128-lane dense result), ONE sigmoid over 6*H2
    # lanes, tanh over 2*H2 lanes, fused cell math over [Bp, 2*H2].
    for t in range(T):
        g = gates_x[t * Bp:(t + 1) * Bp, :] + jnp.dot(
            h_cat.astype(jnp.bfloat16), whh, preferred_element_type=jnp.float32)
        sg = jax.nn.sigmoid(g[:, :S])
        gg = jnp.tanh(g[:, S:])
        i_cat = sg[:, 0:2 * H2]
        f_cat = sg[:, 2 * H2:4 * H2]
        o_cat = sg[:, 4 * H2:6 * H2]
        c_cat = f_cat * c_cat + i_cat * gg
        h_cat = o_cat * jnp.tanh(c_cat)
        hfs[t] = h_cat[:, 0:H2]            # fwd hidden for time t
        hbs[T - 1 - t] = h_cat[:, H2:]     # bwd hidden for time T-1-t

    # ---- (4) assemble hidden states in registers, ONE bf16 head matmul -----
    h_all = jnp.concatenate(
        [jnp.concatenate(hfs, axis=0), jnp.concatenate(hbs, axis=0)], axis=1)
    out_ref[...] = (jnp.dot(h_all.astype(jnp.bfloat16), wo_ref[...],
                            preferred_element_type=jnp.float32) + bo_ref[...])


def _reorder_ifgo_to_ifog(w, H2):
    """Columns (i,f,g,o) each H2 wide -> (i,f,o,g)."""
    return jnp.concatenate(
        [w[:, 0:H2], w[:, H2:2 * H2], w[:, 3 * H2:4 * H2], w[:, 2 * H2:3 * H2]],
        axis=1)


def _block_weights(wf, wb, H2):
    """Fused two-direction weight.

    wf: [Rf, 4*H2] fwd weights, cols (i,f,o,g) -> drives gate columns 2k*H2.
    wb: [Rb, 4*H2] bwd weights               -> drives gate columns (2k+1)*H2.
    Returns [Rf+Rb, 8*H2] with columns [i_f,i_b, f_f,f_b, o_f,o_b, g_f,g_b].
    """
    zf = jnp.zeros((wf.shape[0], H2), wf.dtype)
    zb = jnp.zeros((wb.shape[0], H2), wb.dtype)
    top = jnp.concatenate(
        [blk for k in range(4) for blk in (wf[:, k * H2:(k + 1) * H2], zf)], axis=1)
    bot = jnp.concatenate(
        [blk for k in range(4) for blk in (zb, wb[:, k * H2:(k + 1) * H2])], axis=1)
    return jnp.concatenate([top, bot], axis=0)


def _interleave_bias(bf, bb, H2):
    """bf/bb: [4*H2] in (i,f,o,g) order -> [1, 8*H2] interleaved per gate."""
    parts = []
    for k in range(4):
        parts.append(bf[k * H2:(k + 1) * H2])
        parts.append(bb[k * H2:(k + 1) * H2])
    return jnp.concatenate(parts).reshape(1, -1)


def blitm_forward(sentence, params):
    """sentence: int32 [B, T] token ids -> emissions float32 [B, T, num_classes]."""
    B, T = sentence.shape
    V, E = params["embed"].shape
    H2 = params["w_hh_f"].shape[1]                 # hidden_dim // 2
    C = params["w_out"].shape[0]

    Bp = ((max(B, 8) + 7) // 8) * 8                # full-sublane batch
    Cp = ((C + 127) // 128) * 128                  # lane-dense output
    Vp = ((V + 7) // 8) * 8                        # sublane-padded vocab

    # Token ids only (the gather itself happens in-kernel): time-major,
    # batch-padded; 2nd column = time-reversed ids so the fused fwd/bwd
    # recurrence reads one aligned row block per step.
    ids_tm = jnp.pad(jnp.transpose(sentence, (1, 0)), ((0, 0), (0, Bp - B)))
    ids2 = jnp.stack(
        [ids_tm.reshape(T * Bp), ids_tm[::-1].reshape(T * Bp)], axis=1
    ).astype(jnp.int32)                                          # [T*Bp, 2]

    tbl = jnp.zeros((Vp, E), jnp.bfloat16).at[:V].set(
        params["embed"].astype(jnp.bfloat16))

    # Host-side (parameter-only) permutation into the fused gate-column layout.
    wih = _block_weights(_reorder_ifgo_to_ifog(params["w_ih_f"].T, H2),
                         _reorder_ifgo_to_ifog(params["w_ih_b"].T, H2),
                         H2).astype(jnp.bfloat16)                # [2E, 8*H2]
    whh = _block_weights(_reorder_ifgo_to_ifog(params["w_hh_f"].T, H2),
                         _reorder_ifgo_to_ifog(params["w_hh_b"].T, H2),
                         H2).astype(jnp.bfloat16)                # [2*H2, 8*H2]
    b_all = _interleave_bias(
        _reorder_ifgo_to_ifog((params["b_ih_f"] + params["b_hh_f"])[None, :], H2)[0],
        _reorder_ifgo_to_ifog((params["b_ih_b"] + params["b_hh_b"])[None, :], H2)[0],
        H2).astype(jnp.float32)                                  # [1, 8*H2]

    wo = jnp.zeros((2 * H2, Cp), jnp.bfloat16).at[:, :C].set(
        params["w_out"].T.astype(jnp.bfloat16))
    bo = jnp.zeros((1, Cp), jnp.float32).at[:, :C].set(params["b_out"])

    kernel = functools.partial(_blitm_kernel, T, Bp, H2, Vp)
    vmem = pl.BlockSpec(memory_space=pltpu.MemorySpace.VMEM)

    # Total operand footprint < 100 KB -> single invocation, no grid (each grid
    # step would add ~0.35 us fixed overhead that dominates at this size).
    # TODO(synk): at realistic B/T, add a batch-block grid axis with
    # dimension_semantics=("parallel",) (keeps v7x's 2nd TensorCore busy) and
    # size tiles for v7x's 64 MiB VMEM via CompilerParams(vmem_limit_bytes=...).
    out2d = pl.pallas_call(
        kernel,
        out_shape=jax.ShapeDtypeStruct((T * Bp, Cp), jnp.float32),
        in_specs=[vmem] * 7,
        out_specs=vmem,
    )(ids2, tbl, wih, b_all, whh, wo, bo)

    em = out2d.reshape(T, Bp, Cp)[:, :B, :C]
    return jnp.transpose(em, (1, 0, 2))                          # [B, T, C]


def blitm_reference(sentence, params):
    """Pure-JAX f32 reference (same math) for a sanity check."""
    emb = params["embed"][sentence].astype(jnp.float32)
    x = jnp.transpose(emb, (1, 0, 2))                            # [T, B, E]
    B = x.shape[1]
    H2 = params["w_hh_f"].shape[1]

    def run_dir(wih, whh, bih, bhh, reverse):
        wih_T, whh_T = wih.T, whh.T
        b = (bih + bhh)[None, :]

        def step(carry, xt):
            h, c = carry
            g = xt @ wih_T + h @ whh_T + b
            i = jax.nn.sigmoid(g[:, :H2])
            f = jax.nn.sigmoid(g[:, H2:2 * H2])
            gg = jnp.tanh(g[:, 2 * H2:3 * H2])
            o = jax.nn.sigmoid(g[:, 3 * H2:])
            c = f * c + i * gg
            h = o * jnp.tanh(c)
            return (h, c), h

        zeros = jnp.zeros((B, H2), jnp.float32)
        _, hs = lax.scan(step, (zeros, zeros), x, reverse=reverse)
        return hs                                                # [T, B, H2]

    hf = run_dir(params["w_ih_f"], params["w_hh_f"],
                 params["b_ih_f"], params["b_hh_f"], False)
    hb = run_dir(params["w_ih_b"], params["w_hh_b"],
                 params["b_ih_b"], params["b_hh_b"], True)
    lstm_out = jnp.concatenate([hf, hb], axis=-1)                # [T, B, H]
    em = jnp.einsum("tbh,ch->tbc", lstm_out, params["w_out"]) + params["b_out"]
    return jnp.transpose(em, (1, 0, 2))


def make_params(key, num_classes, vocab_length, embedding_dim, hidden_dim):
    H2 = hidden_dim // 2
    ks = jax.random.split(key, 12)
    s_lstm = 1.0 / math.sqrt(H2)
    s_lin = 1.0 / math.sqrt(hidden_dim)
    u = lambda k, shape, s: jax.random.uniform(k, shape, jnp.float32, -s, s)
    return {
        "embed": jax.random.normal(ks[0], (vocab_length, embedding_dim), jnp.float32),
        # forward-direction LSTM params (PyTorch shapes, gate order i,f,g,o)
        "w_ih_f": u(ks[1], (4 * H2, embedding_dim), s_lstm),
        "w_hh_f": u(ks[2], (4 * H2, H2), s_lstm),
        "b_ih_f": u(ks[3], (4 * H2,), s_lstm),
        "b_hh_f": u(ks[4], (4 * H2,), s_lstm),
        # reverse-direction LSTM params
        "w_ih_b": u(ks[5], (4 * H2, embedding_dim), s_lstm),
        "w_hh_b": u(ks[6], (4 * H2, H2), s_lstm),
        "b_ih_b": u(ks[7], (4 * H2,), s_lstm),
        "b_hh_b": u(ks[8], (4 * H2,), s_lstm),
        # hidden2tag Linear
        "w_out": u(ks[9], (num_classes, hidden_dim), s_lin),
        "b_out": u(ks[10], (num_classes,), s_lin),
    }


if __name__ == "__main__":
    num_classes = 8
    vocab_length = 50
    embedding_dim = 32
    hidden_dim = 32
    B, T = 2, 8

    key = jax.random.PRNGKey(0)
    k_param, k_sent = jax.random.split(key)
    params = make_params(k_param, num_classes, vocab_length, embedding_dim, hidden_dim)
    sentence = jax.random.randint(k_sent, (B, T), 0, vocab_length, dtype=jnp.int32)

    out = jax.jit(blitm_forward)(sentence, params)
    out = jax.block_until_ready(out)
    assert out.shape == (B, T, num_classes), out.shape

    ref = blitm_reference(sentence, params)
    max_err = float(jnp.max(jnp.abs(out - ref)))
    assert max_err < 5e-2, f"max abs error too large: {max_err}"

    print("KERNEL_OK")
</pallas_src>

<mosaic_0001>
module attributes {stable_mosaic.version = 11 : i64} {
  func.func @_blitm_kernel(%arg0: memref<64x2xi32, #tpu.memory_space<vmem>>, %arg1: memref<56x32xbf16, #tpu.memory_space<vmem>>, %arg2: memref<64x128xbf16, #tpu.memory_space<vmem>>, %arg3: memref<1x128xf32, #tpu.memory_space<vmem>>, %arg4: memref<32x128xbf16, #tpu.memory_space<vmem>>, %arg5: memref<32x128xbf16, #tpu.memory_space<vmem>>, %arg6: memref<1x128xf32, #tpu.memory_space<vmem>>, %arg7: memref<64x128xf32, #tpu.memory_space<vmem>>) attributes {dimension_semantics = [], scalar_prefetch = 0 : i64, scratch_operands = 0 : i64, tpu.core_type = #tpu.core_type<tc>} {
    %c0 = arith.constant 0 : index
    %c0_0 = arith.constant 0 : index
    %0 = vector.load %arg0[%c0, %c0_0] : memref<64x2xi32, #tpu.memory_space<vmem>>, vector<64x2xi32>
    %1 = tpu.iota {dimensions = array<i32: 1>} : vector<64x56xi32>
    %2 = vector.extract_strided_slice %0 {offsets = [0, 0], sizes = [64, 1], strides = [1, 1]} : vector<64x2xi32> to vector<64x1xi32>
    %3 = vector.broadcast %2 : vector<64x1xi32> to vector<64x56xi32>
    %4 = arith.cmpi eq, %3, %1 : vector<64x56xi32>
    %cst = arith.constant 1.000000e+00 : f32
    %cst_1 = arith.constant 0.000000e+00 : f32
    %5 = vector.broadcast %cst : f32 to vector<64x56xf32>
    %6 = vector.broadcast %cst_1 : f32 to vector<64x56xf32>
    %7 = arith.select %4, %5, %6 : vector<64x56xi1>, vector<64x56xf32>
    %8 = arith.truncf %7 : vector<64x56xf32> to vector<64x56xbf16>
    %9 = vector.extract_strided_slice %0 {offsets = [0, 1], sizes = [64, 1], strides = [1, 1]} : vector<64x2xi32> to vector<64x1xi32>
    %10 = vector.broadcast %9 : vector<64x1xi32> to vector<64x56xi32>
    %11 = arith.cmpi eq, %10, %1 : vector<64x56xi32>
    %cst_2 = arith.constant 1.000000e+00 : f32
    %cst_3 = arith.constant 0.000000e+00 : f32
    %12 = vector.broadcast %cst_2 : f32 to vector<64x56xf32>
    %13 = vector.broadcast %cst_3 : f32 to vector<64x56xf32>
    %14 = arith.select %11, %12, %13 : vector<64x56xi1>, vector<64x56xf32>
    %15 = arith.truncf %14 : vector<64x56xf32> to vector<64x56xbf16>
    %c0_4 = arith.constant 0 : index
    %c0_5 = arith.constant 0 : index
    %16 = vector.load %arg1[%c0_4, %c0_5] : memref<56x32xbf16, #tpu.memory_space<vmem>>, vector<56x32xbf16>
    %cst_6 = arith.constant dense<0.000000e+00> : vector<64x32xf32>
    %17 = tpu.matmul %8, %16, %cst_6 {dimension_numbers = #tpu.dot_dimension_numbers<[1], [0], [0], [1], [0, 0, 1, 1], [], []>} : vector<64x56xbf16>, vector<56x32xbf16>, vector<64x32xf32> -> vector<64x32xf32>
    %cst_7 = arith.constant dense<0.000000e+00> : vector<64x32xf32>
    %18 = tpu.matmul %15, %16, %cst_7 {dimension_numbers = #tpu.dot_dimension_numbers<[1], [0], [0], [1], [0, 0, 1, 1], [], []>} : vector<64x56xbf16>, vector<56x32xbf16>, vector<64x32xf32> -> vector<64x32xf32>
    %19 = tpu.concatenate %17, %18 in 1 : vector<64x32xf32>, vector<64x32xf32> -> vector<64x64xf32>
    %20 = arith.truncf %19 : vector<64x64xf32> to vector<64x64xbf16>
    %c0_8 = arith.constant 0 : index
    %c0_9 = arith.constant 0 : index
    %21 = vector.load %arg2[%c0_8, %c0_9] : memref<64x128xbf16, #tpu.memory_space<vmem>>, vector<64x128xbf16>
    %cst_10 = arith.constant dense<0.000000e+00> : vector<64x128xf32>
    %22 = tpu.matmul %20, %21, %cst_10 {dimension_numbers = #tpu.dot_dimension_numbers<[1], [0], [0], [1], [0, 0, 1, 1], [], []>} : vector<64x64xbf16>, vector<64x128xbf16>, vector<64x128xf32> -> vector<64x128xf32>
    %c0_11 = arith.constant 0 : index
    %c0_12 = arith.constant 0 : index
    %23 = vector.load %arg3[%c0_11, %c0_12] : memref<1x128xf32, #tpu.memory_space<vmem>>, vector<1x128xf32>
    %24 = vector.broadcast %23 : vector<1x128xf32> to vector<64x128xf32>
    %25 = arith.addf %22, %24 : vector<64x128xf32>
    %c0_13 = arith.constant 0 : index
    %c0_14 = arith.constant 0 : index
    %26 = vector.load %arg4[%c0_13, %c0_14] : memref<32x128xbf16, #tpu.memory_space<vmem>>, vector<32x128xbf16>
    %cst_15 = arith.constant 0.000000e+00 : f32
    %27 = vector.broadcast %cst_15 : f32 to vector<8x32xf32>
    %cst_16 = arith.constant 0.000000e+00 : f32
    %28 = vector.broadcast %cst_16 : f32 to vector<8x32xf32>
    %29 = vector.extract_strided_slice %25 {offsets = [0, 0], sizes = [8, 128], strides = [1, 1]} : vector<64x128xf32> to vector<8x128xf32>
    %30 = arith.truncf %27 : vector<8x32xf32> to vector<8x32xbf16>
    %cst_17 = arith.constant dense<0.000000e+00> : vector<8x128xf32>
    %31 = tpu.matmul %30, %26, %cst_17 {dimension_numbers = #tpu.dot_dimension_numbers<[1], [0], [0], [1], [0, 0, 1, 1], [], []>} : vector<8x32xbf16>, vector<32x128xbf16>, vector<8x128xf32> -> vector<8x128xf32>
    %32 = arith.addf %29, %31 : vector<8x128xf32>
    %33 = vector.extract_strided_slice %32 {offsets = [0, 0], sizes = [8, 96], strides = [1, 1]} : vector<8x128xf32> to vector<8x96xf32>
    %34 = arith.negf %33 : vector<8x96xf32>
    %35 = math.exp %34 : vector<8x96xf32>
    %cst_18 = arith.constant 1.000000e+00 : f32
    %36 = vector.broadcast %cst_18 : f32 to vector<8x96xf32>
    %37 = arith.addf %36, %35 : vector<8x96xf32>
    %38 = arith.divf %36, %37 : vector<8x96xf32>
    %39 = vector.extract_strided_slice %32 {offsets = [0, 96], sizes = [8, 32], strides = [1, 1]} : vector<8x128xf32> to vector<8x32xf32>
    %40 = math.tanh %39 : vector<8x32xf32>
    %41 = vector.extract_strided_slice %38 {offsets = [0, 0], sizes = [8, 32], strides = [1, 1]} : vector<8x96xf32> to vector<8x32xf32>
    %42 = vector.extract_strided_slice %38 {offsets = [0, 32], sizes = [8, 32], strides = [1, 1]} : vector<8x96xf32> to vector<8x32xf32>
    %43 = vector.extract_strided_slice %38 {offsets = [0, 64], sizes = [8, 32], strides = [1, 1]} : vector<8x96xf32> to vector<8x32xf32>
    %44 = arith.mulf %42, %28 : vector<8x32xf32>
    %45 = arith.mulf %41, %40 : vector<8x32xf32>
    %46 = arith.addf %44, %45 : vector<8x32xf32>
    %47 = math.tanh %46 : vector<8x32xf32>
    %48 = arith.mulf %43, %47 : vector<8x32xf32>
    %49 = vector.extract_strided_slice %48 {offsets = [0, 0], sizes = [8, 16], strides = [1, 1]} : vector<8x32xf32> to vector<8x16xf32>
    %50 = vector.extract_strided_slice %48 {offsets = [0, 16], sizes = [8, 16], strides = [1, 1]} : vector<8x32xf32> to vector<8x16xf32>
    %51 = vector.extract_strided_slice %25 {offsets = [8, 0], sizes = [8, 128], strides = [1, 1]} : vector<64x128xf32> to vector<8x128xf32>
    %52 = arith.truncf %48 : vector<8x32xf32> to vector<8x32xbf16>
    %cst_19 = arith.constant dense<0.000000e+00> : vector<8x128xf32>
    %53 = tpu.matmul %52, %26, %cst_19 {dimension_numbers = #tpu.dot_dimension_numbers<[1], [0], [0], [1], [0, 0, 1, 1], [], []>} : vector<8x32xbf16>, vector<32x128xbf16>, vector<8x128xf32> -> vector<8x128xf32>
    %54 = arith.addf %51, %53 : vector<8x128xf32>
    %55 = vector.extract_strided_slice %54 {offsets = [0, 0], sizes = [8, 96], strides = [1, 1]} : vector<8x128xf32> to vector<8x96xf32>
    %56 = arith.negf %55 : vector<8x96xf32>
    %57 = math.exp %56 : vector<8x96xf32>
    %cst_20 = arith.constant 1.000000e+00 : f32
    %58 = vector.broadcast %cst_20 : f32 to vector<8x96xf32>
    %59 = arith.addf %58, %57 : vector<8x96xf32>
    %60 = arith.divf %58, %59 : vector<8x96xf32>
    %61 = vector.extract_strided_slice %54 {offsets = [0, 96], sizes = [8, 32], strides = [1, 1]} : vector<8x128xf32> to vector<8x32xf32>
    %62 = math.tanh %61 : vector<8x32xf32>
    %63 = vector.extract_strided_slice %60 {offsets = [0, 0], sizes = [8, 32], strides = [1, 1]} : vector<8x96xf32> to vector<8x32xf32>
    %64 = vector.extract_strided_slice %60 {offsets = [0, 32], sizes = [8, 32], strides = [1, 1]} : vector<8x96xf32> to vector<8x32xf32>
    %65 = vector.extract_strided_slice %60 {offsets = [0, 64], sizes = [8, 32], strides = [1, 1]} : vector<8x96xf32> to vector<8x32xf32>
    %66 = arith.mulf %64, %46 : vector<8x32xf32>
    %67 = arith.mulf %63, %62 : vector<8x32xf32>
    %68 = arith.addf %66, %67 : vector<8x32xf32>
    %69 = math.tanh %68 : vector<8x32xf32>
    %70 = arith.mulf %65, %69 : vector<8x32xf32>
    %71 = vector.extract_strided_slice %70 {offsets = [0, 0], sizes = [8, 16], strides = [1, 1]} : vector<8x32xf32> to vector<8x16xf32>
    %72 = vector.extract_strided_slice %70 {offsets = [0, 16], sizes = [8, 16], strides = [1, 1]} : vector<8x32xf32> to vector<8x16xf32>
    %73 = vector.extract_strided_slice %25 {offsets = [16, 0], sizes = [8, 128], strides = [1, 1]} : vector<64x128xf32> to vector<8x128xf32>
    %74 = arith.truncf %70 : vector<8x32xf32> to vector<8x32xbf16>
    %cst_21 = arith.constant dense<0.000000e+00> : vector<8x128xf32>
    %75 = tpu.matmul %74, %26, %cst_21 {dimension_numbers = #tpu.dot_dimension_numbers<[1], [0], [0], [1], [0, 0, 1, 1], [], []>} : vector<8x32xbf16>, vector<32x128xbf16>, vector<8x128xf32> -> vector<8x128xf32>
    %76 = arith.addf %73, %75 : vector<8x128xf32>
    %77 = vector.extract_strided_slice %76 {offsets = [0, 0], sizes = [8, 96], strides = [1, 1]} : vector<8x128xf32> to vector<8x96xf32>
    %78 = arith.negf %77 : vector<8x96xf32>
    %79 = math.exp %78 : vector<8x96xf32>
    %cst_22 = arith.constant 1.000000e+00 : f32
    %80 = vector.broadcast %cst_22 : f32 to vector<8x96xf32>
    %81 = arith.addf %80, %79 : vector<8x96xf32>
    %82 = arith.divf %80, %81 : vector<8x96xf32>
    %83 = vector.extract_strided_slice %76 {offsets = [0, 96], sizes = [8, 32], strides = [1, 1]} : vector<8x128xf32> to vector<8x32xf32>
    %84 = math.tanh %83 : vector<8x32xf32>
    %85 = vector.extract_strided_slice %82 {offsets = [0, 0], sizes = [8, 32], strides = [1, 1]} : vector<8x96xf32> to vector<8x32xf32>
    %86 = vector.extract_strided_slice %82 {offsets = [0, 32], sizes = [8, 32], strides = [1, 1]} : vector<8x96xf32> to vector<8x32xf32>
    %87 = vector.extract_strided_slice %82 {offsets = [0, 64], sizes = [8, 32], strides = [1, 1]} : vector<8x96xf32> to vector<8x32xf32>
    %88 = arith.mulf %86, %68 : vector<8x32xf32>
    %89 = arith.mulf %85, %84 : vector<8x32xf32>
    %90 = arith.addf %88, %89 : vector<8x32xf32>
    %91 = math.tanh %90 : vector<8x32xf32>
    %92 = arith.mulf %87, %91 : vector<8x32xf32>
    %93 = vector.extract_strided_slice %92 {offsets = [0, 0], sizes = [8, 16], strides = [1, 1]} : vector<8x32xf32> to vector<8x16xf32>
    %94 = vector.extract_strided_slice %92 {offsets = [0, 16], sizes = [8, 16], strides = [1, 1]} : vector<8x32xf32> to vector<8x16xf32>
    %95 = vector.extract_strided_slice %25 {offsets = [24, 0], sizes = [8, 128], strides = [1, 1]} : vector<64x128xf32> to vector<8x128xf32>
    %96 = arith.truncf %92 : vector<8x32xf32> to vector<8x32xbf16>
    %cst_23 = arith.constant dense<0.000000e+00> : vector<8x128xf32>
    %97 = tpu.matmul %96, %26, %cst_23 {dimension_numbers = #tpu.dot_dimension_numbers<[1], [0], [0], [1], [0, 0, 1, 1], [], []>} : vector<8x32xbf16>, vector<32x128xbf16>, vector<8x128xf32> -> vector<8x128xf32>
    %98 = arith.addf %95, %97 : vector<8x128xf32>
    %99 = vector.extract_strided_slice %98 {offsets = [0, 0], sizes = [8, 96], strides = [1, 1]} : vector<8x128xf32> to vector<8x96xf32>
    %100 = arith.negf %99 : vector<8x96xf32>
    %101 = math.exp %100 : vector<8x96xf32>
    %cst_24 = arith.constant 1.000000e+00 : f32
    %102 = vector.broadcast %cst_24 : f32 to vector<8x96xf32>
    %103 = arith.addf %102, %101 : vector<8x96xf32>
    %104 = arith.divf %102, %103 : vector<8x96xf32>
    %105 = vector.extract_strided_slice %98 {offsets = [0, 96], sizes = [8, 32], strides = [1, 1]} : vector<8x128xf32> to vector<8x32xf32>
    %106 = math.tanh %105 : vector<8x32xf32>
    %107 = vector.extract_strided_slice %104 {offsets = [0, 0], sizes = [8, 32], strides = [1, 1]} : vector<8x96xf32> to vector<8x32xf32>
    %108 = vector.extract_strided_slice %104 {offsets = [0, 32], sizes = [8, 32], strides = [1, 1]} : vector<8x96xf32> to vector<8x32xf32>
    %109 = vector.extract_strided_slice %104 {offsets = [0, 64], sizes = [8, 32], strides = [1, 1]} : vector<8x96xf32> to vector<8x32xf32>
    %110 = arith.mulf %108, %90 : vector<8x32xf32>
    %111 = arith.mulf %107, %106 : vector<8x32xf32>
    %112 = arith.addf %110, %111 : vector<8x32xf32>
    %113 = math.tanh %112 : vector<8x32xf32>
    %114 = arith.mulf %109, %113 : vector<8x32xf32>
    %115 = vector.extract_strided_slice %114 {offsets = [0, 0], sizes = [8, 16], strides = [1, 1]} : vector<8x32xf32> to vector<8x16xf32>
    %116 = vector.extract_strided_slice %114 {offsets = [0, 16], sizes = [8, 16], strides = [1, 1]} : vector<8x32xf32> to vector<8x16xf32>
    %117 = vector.extract_strided_slice %25 {offsets = [32, 0], sizes = [8, 128], strides = [1, 1]} : vector<64x128xf32> to vector<8x128xf32>
    %118 = arith.truncf %114 : vector<8x32xf32> to vector<8x32xbf16>
    %cst_25 = arith.constant dense<0.000000e+00> : vector<8x128xf32>
    %119 = tpu.matmul %118, %26, %cst_25 {dimension_numbers = #tpu.dot_dimension_numbers<[1], [0], [0], [1], [0, 0, 1, 1], [], []>} : vector<8x32xbf16>, vector<32x128xbf16>, vector<8x128xf32> -> vector<8x128xf32>
    %120 = arith.addf %117, %119 : vector<8x128xf32>
    %121 = vector.extract_strided_slice %120 {offsets = [0, 0], sizes = [8, 96], strides = [1, 1]} : vector<8x128xf32> to vector<8x96xf32>
    %122 = arith.negf %121 : vector<8x96xf32>
    %123 = math.exp %122 : vector<8x96xf32>
    %cst_26 = arith.constant 1.000000e+00 : f32
    %124 = vector.broadcast %cst_26 : f32 to vector<8x96xf32>
    %125 = arith.addf %124, %123 : vector<8x96xf32>
    %126 = arith.divf %124, %125 : vector<8x96xf32>
    %127 = vector.extract_strided_slice %120 {offsets = [0, 96], sizes = [8, 32], strides = [1, 1]} : vector<8x128xf32> to vector<8x32xf32>
    %128 = math.tanh %127 : vector<8x32xf32>
    %129 = vector.extract_strided_slice %126 {offsets = [0, 0], sizes = [8, 32], strides = [1, 1]} : vector<8x96xf32> to vector<8x32xf32>
    %130 = vector.extract_strided_slice %126 {offsets = [0, 32], sizes = [8, 32], strides = [1, 1]} : vector<8x96xf32> to vector<8x32xf32>
    %131 = vector.extract_strided_slice %126 {offsets = [0, 64], sizes = [8, 32], strides = [1, 1]} : vector<8x96xf32> to vector<8x32xf32>
    %132 = arith.mulf %130, %112 : vector<8x32xf32>
    %133 = arith.mulf %129, %128 : vector<8x32xf32>
    %134 = arith.addf %132, %133 : vector<8x32xf32>
    %135 = math.tanh %134 : vector<8x32xf32>
    %136 = arith.mulf %131, %135 : vector<8x32xf32>
    %137 = vector.extract_strided_slice %136 {offsets = [0, 0], sizes = [8, 16], strides = [1, 1]} : vector<8x32xf32> to vector<8x16xf32>
    %138 = vector.extract_strided_slice %136 {offsets = [0, 16], sizes = [8, 16], strides = [1, 1]} : vector<8x32xf32> to vector<8x16xf32>
    %139 = vector.extract_strided_slice %25 {offsets = [40, 0], sizes = [8, 128], strides = [1, 1]} : vector<64x128xf32> to vector<8x128xf32>
    %140 = arith.truncf %136 : vector<8x32xf32> to vector<8x32xbf16>
    %cst_27 = arith.constant dense<0.000000e+00> : vector<8x128xf32>
    %141 = tpu.matmul %140, %26, %cst_27 {dimension_numbers = #tpu.dot_dimension_numbers<[1], [0], [0], [1], [0, 0, 1, 1], [], []>} : vector<8x32xbf16>, vector<32x128xbf16>, vector<8x128xf32> -> vector<8x128xf32>
    %142 = arith.addf %139, %141 : vector<8x128xf32>
    %143 = vector.extract_strided_slice %142 {offsets = [0, 0], sizes = [8, 96], strides = [1, 1]} : vector<8x128xf32> to vector<8x96xf32>
    %144 = arith.negf %143 : vector<8x96xf32>
    %145 = math.exp %144 : vector<8x96xf32>
    %cst_28 = arith.constant 1.000000e+00 : f32
    %146 = vector.broadcast %cst_28 : f32 to vector<8x96xf32>
    %147 = arith.addf %146, %145 : vector<8x96xf32>
    %148 = arith.divf %146, %147 : vector<8x96xf32>
    %149 = vector.extract_strided_slice %142 {offsets = [0, 96], sizes = [8, 32], strides = [1, 1]} : vector<8x128xf32> to vector<8x32xf32>
    %150 = math.tanh %149 : vector<8x32xf32>
    %151 = vector.extract_strided_slice %148 {offsets = [0, 0], sizes = [8, 32], strides = [1, 1]} : vector<8x96xf32> to vector<8x32xf32>
    %152 = vector.extract_strided_slice %148 {offsets = [0, 32], sizes = [8, 32], strides = [1, 1]} : vector<8x96xf32> to vector<8x32xf32>
    %153 = vector.extract_strided_slice %148 {offsets = [0, 64], sizes = [8, 32], strides = [1, 1]} : vector<8x96xf32> to vector<8x32xf32>
    %154 = arith.mulf %152, %134 : vector<8x32xf32>
    %155 = arith.mulf %151, %150 : vector<8x32xf32>
    %156 = arith.addf %154, %155 : vector<8x32xf32>
    %157 = math.tanh %156 : vector<8x32xf32>
    %158 = arith.mulf %153, %157 : vector<8x32xf32>
    %159 = vector.extract_strided_slice %158 {offsets = [0, 0], sizes = [8, 16], strides = [1, 1]} : vector<8x32xf32> to vector<8x16xf32>
    %160 = vector.extract_strided_slice %158 {offsets = [0, 16], sizes = [8, 16], strides = [1, 1]} : vector<8x32xf32> to vector<8x16xf32>
    %161 = vector.extract_strided_slice %25 {offsets = [48, 0], sizes = [8, 128], strides = [1, 1]} : vector<64x128xf32> to vector<8x128xf32>
    %162 = arith.truncf %158 : vector<8x32xf32> to vector<8x32xbf16>
    %cst_29 = arith.constant dense<0.000000e+00> : vector<8x128xf32>
    %163 = tpu.matmul %162, %26, %cst_29 {dimension_numbers = #tpu.dot_dimension_numbers<[1], [0], [0], [1], [0, 0, 1, 1], [], []>} : vector<8x32xbf16>, vector<32x128xbf16>, vector<8x128xf32> -> vector<8x128xf32>
    %164 = arith.addf %161, %163 : vector<8x128xf32>
    %165 = vector.extract_strided_slice %164 {offsets = [0, 0], sizes = [8, 96], strides = [1, 1]} : vector<8x128xf32> to vector<8x96xf32>
    %166 = arith.negf %165 : vector<8x96xf32>
    %167 = math.exp %166 : vector<8x96xf32>
    %cst_30 = arith.constant 1.000000e+00 : f32
    %168 = vector.broadcast %cst_30 : f32 to vector<8x96xf32>
    %169 = arith.addf %168, %167 : vector<8x96xf32>
    %170 = arith.divf %168, %169 : vector<8x96xf32>
    %171 = vector.extract_strided_slice %164 {offsets = [0, 96], sizes = [8, 32], strides = [1, 1]} : vector<8x128xf32> to vector<8x32xf32>
    %172 = math.tanh %171 : vector<8x32xf32>
    %173 = vector.extract_strided_slice %170 {offsets = [0, 0], sizes = [8, 32], strides = [1, 1]} : vector<8x96xf32> to vector<8x32xf32>
    %174 = vector.extract_strided_slice %170 {offsets = [0, 32], sizes = [8, 32], strides = [1, 1]} : vector<8x96xf32> to vector<8x32xf32>
    %175 = vector.extract_strided_slice %170 {offsets = [0, 64], sizes = [8, 32], strides = [1, 1]} : vector<8x96xf32> to vector<8x32xf32>
    %176 = arith.mulf %174, %156 : vector<8x32xf32>
    %177 = arith.mulf %173, %172 : vector<8x32xf32>
    %178 = arith.addf %176, %177 : vector<8x32xf32>
    %179 = math.tanh %178 : vector<8x32xf32>
    %180 = arith.mulf %175, %179 : vector<8x32xf32>
    %181 = vector.extract_strided_slice %180 {offsets = [0, 0], sizes = [8, 16], strides = [1, 1]} : vector<8x32xf32> to vector<8x16xf32>
    %182 = vector.extract_strided_slice %180 {offsets = [0, 16], sizes = [8, 16], strides = [1, 1]} : vector<8x32xf32> to vector<8x16xf32>
    %183 = vector.extract_strided_slice %25 {offsets = [56, 0], sizes = [8, 128], strides = [1, 1]} : vector<64x128xf32> to vector<8x128xf32>
    %184 = arith.truncf %180 : vector<8x32xf32> to vector<8x32xbf16>
    %cst_31 = arith.constant dense<0.000000e+00> : vector<8x128xf32>
    %185 = tpu.matmul %184, %26, %cst_31 {dimension_numbers = #tpu.dot_dimension_numbers<[1], [0], [0], [1], [0, 0, 1, 1], [], []>} : vector<8x32xbf16>, vector<32x128xbf16>, vector<8x128xf32> -> vector<8x128xf32>
    %186 = arith.addf %183, %185 : vector<8x128xf32>
    %187 = vector.extract_strided_slice %186 {offsets = [0, 0], sizes = [8, 96], strides = [1, 1]} : vector<8x128xf32> to vector<8x96xf32>
    %188 = arith.negf %187 : vector<8x96xf32>
    %189 = math.exp %188 : vector<8x96xf32>
    %cst_32 = arith.constant 1.000000e+00 : f32
    %190 = vector.broadcast %cst_32 : f32 to vector<8x96xf32>
    %191 = arith.addf %190, %189 : vector<8x96xf32>
    %192 = arith.divf %190, %191 : vector<8x96xf32>
    %193 = vector.extract_strided_slice %186 {offsets = [0, 96], sizes = [8, 32], strides = [1, 1]} : vector<8x128xf32> to vector<8x32xf32>
    %194 = math.tanh %193 : vector<8x32xf32>
    %195 = vector.extract_strided_slice %192 {offsets = [0, 0], sizes = [8, 32], strides = [1, 1]} : vector<8x96xf32> to vector<8x32xf32>
    %196 = vector.extract_strided_slice %192 {offsets = [0, 32], sizes = [8, 32], strides = [1, 1]} : vector<8x96xf32> to vector<8x32xf32>
    %197 = vector.extract_strided_slice %192 {offsets = [0, 64], sizes = [8, 32], strides = [1, 1]} : vector<8x96xf32> to vector<8x32xf32>
    %198 = arith.mulf %196, %178 : vector<8x32xf32>
    %199 = arith.mulf %195, %194 : vector<8x32xf32>
    %200 = arith.addf %198, %199 : vector<8x32xf32>
    %201 = math.tanh %200 : vector<8x32xf32>
    %202 = arith.mulf %197, %201 : vector<8x32xf32>
    %203 = vector.extract_strided_slice %202 {offsets = [0, 0], sizes = [8, 16], strides = [1, 1]} : vector<8x32xf32> to vector<8x16xf32>
    %204 = vector.extract_strided_slice %202 {offsets = [0, 16], sizes = [8, 16], strides = [1, 1]} : vector<8x32xf32> to vector<8x16xf32>
    %205 = tpu.concatenate %49, %71, %93, %115, %137, %159, %181, %203 in 0 : vector<8x16xf32>, vector<8x16xf32>, vector<8x16xf32>, vector<8x16xf32>, vector<8x16xf32>, vector<8x16xf32>, vector<8x16xf32>, vector<8x16xf32> -> vector<64x16xf32>
    %206 = tpu.concatenate %204, %182, %160, %138, %116, %94, %72, %50 in 0 : vector<8x16xf32>, vector<8x16xf32>, vector<8x16xf32>, vector<8x16xf32>, vector<8x16xf32>, vector<8x16xf32>, vector<8x16xf32>, vector<8x16xf32> -> vector<64x16xf32>
    %207 = tpu.concatenate %205, %206 in 1 : vector<64x16xf32>, vector<64x16xf32> -> vector<64x32xf32>
    %208 = arith.truncf %207 : vector<64x32xf32> to vector<64x32xbf16>
    %c0_33 = arith.constant 0 : index
    %c0_34 = arith.constant 0 : index
    %209 = vector.load %arg5[%c0_33, %c0_34] : memref<32x128xbf16, #tpu.memory_space<vmem>>, vector<32x128xbf16>
    %cst_35 = arith.constant dense<0.000000e+00> : vector<64x128xf32>
    %210 = tpu.matmul %208, %209, %cst_35 {dimension_numbers = #tpu.dot_dimension_numbers<[1], [0], [0], [1], [0, 0, 1, 1], [], []>} : vector<64x32xbf16>, vector<32x128xbf16>, vector<64x128xf32> -> vector<64x128xf32>
    %c0_36 = arith.constant 0 : index
    %c0_37 = arith.constant 0 : index
    %211 = vector.load %arg6[%c0_36, %c0_37] : memref<1x128xf32, #tpu.memory_space<vmem>>, vector<1x128xf32>
    %212 = vector.broadcast %211 : vector<1x128xf32> to vector<64x128xf32>
    %213 = arith.addf %210, %212 : vector<64x128xf32>
    %c0_38 = arith.constant 0 : index
    %c0_39 = arith.constant 0 : index
    %214 = vector.load %arg7[%c0_38, %c0_39] : memref<64x128xf32, #tpu.memory_space<vmem>>, vector<64x128xf32>
    tpu.vector_store %arg7[%c0_38, %c0_39], %213 {strides = array<i32>} : memref<64x128xf32, #tpu.memory_space<vmem>>, vector<64x128xf32>,
    return
  }
}

</mosaic_0001>

<bundles_post_ra>
// kernel: blitm_forward.1
= control target key start
LH: loop header
LB: loop body
LE: loop exit
PB: predicated region body
PF: predicated region fallthrough
CT: control target
= control target key end

     0   :  { %v1170_v0 = vmov 1   ;;  %v1171_v1 = vmov 0   ;;  %vm166_vm0 = vcmask 1043456   ;;  %v35_v18 = vlaneseq  ;;  %s1478_s0 = inlined_call_operand.vmem [shape: s32[64,2], index: 0, kind: input, shape index: {}]   ;;  %s1479_s1 = inlined_call_operand.vmem [shape: bf16[56,32], index: 1, kind: input, shape index: {}]   ;;  %s1480_s2 = inlined_call_operand.vmem [shape: bf16[64,128], index: 2, kind: input, shape index: {}]   ;;  %s1481_s3 = inlined_call_operand.vmem [shape: f32[1,128], index: 3, kind: input, shape index: {}]   ;;  %s1482_s4 = inlined_call_operand.vmem [shape: bf16[32,128], index: 4, kind: input, shape index: {}]   ;;  %s1483_s5 = inlined_call_operand.vmem [shape: bf16[32,128], index: 5, kind: input, shape index: {}]   ;;  %s1484_s6 = inlined_call_operand.vmem [shape: f32[1,128], index: 6, kind: input, shape index: {}]   ;;  %s1485_s7 = inlined_call_operand.vmem [shape: f32[64,128], index: 7, kind: output, shape index: {}]  }
   0x1   :  { %1055 = vset.pattern.permute.xlu1 %v1170_v0  ;;  %1054 = vset.pattern.permute.xlu0 %v1171_v1  ;;  %v33_v2 = vld [vmem:[%s1478_s0 + $0x30] sm:$0xff]  ;;  %v27_v3 = vld [vmem:[%s1478_s0] sm:$0xff]  ;;  %v131_v5 = vld [vmem:[%s1479_s1 + $0x18] sm:$0xf]  ;;  %v1172_v25 = vmov 0.0   ;;  %vm153_vm3 = vcmask 457728  }
   0x2   :  { %56 = vperm.xlu0 %1054, %v33_v2   ;;  %82 = vperm.xlu1 %1055, %v27_v3   ;;  %v29_v4 = vld [vmem:[%s1478_s0 + $0x10] sm:$0xff]  ;;  %v145_v6 = vunpack.c.l.b16 %v131_v5  ;;  %v34_v8 = vld [vmem:[%s1478_s0 + $0x38] sm:$0xff]  ;;  %v28_v9 = vld [vmem:[%s1478_s0 + $0x8] sm:$0xff]  ;;  %v36_v21 = vand.u32 127, %v35_v18 }
   0x3   :  { %1056 = vset.pattern.permute.xlu2 %v1170_v0  ;;  %v30_v11 = vld [vmem:[%s1478_s0 + $0x18] sm:$0xff]  ;;  %v32_v12 = vld [vmem:[%s1478_s0 + $0x28] sm:$0xff]  ;;  %v31_v13 = vld [vmem:[%s1478_s0 + $0x20] sm:$0xff] }
   0x4   :  { %88 = vperm.xlu2 %1056, %v29_v4   ;;  %v149_v7 = vpack.c.b16 %v145_v6, %v145_v6  ;;  %v1034_v14 = vld [vmem:[%s1479_s1 + $0x10] sm:$0xff]  ;;  %v1033_v15 = vld [vmem:[%s1479_s1 + $0x8] sm:$0xff]  ;;  %v1032_v16 = vld [vmem:[%s1479_s1] sm:$0xff]  ;;  %s1173_s1 = smov 32  }
   0x5   :  { %v1038_v5 = vld [vmem:[%s1480_s2 + $0x18] sm:$0xff]  ;;  %v1037_v6 = vld [vmem:[%s1480_s2 + $0x10] sm:$0xff] }
   0x6   :  { %v168_v10 = vsel %vm166_vm0, %v149_v7, 0  ;;  %338 = vmatpush.bf16.msra.mxu2 %v1038_v5 }
   0x7   :  { %1043 = vmatpush.bf16.msra.mxu1 %v168_v10  ;;  %174 = vmatpush.bf16.msra.mxu0 %v168_v10 }
   0xa   :  { %59 = vperm.xlu0 %1054, %v34_v8   ;;  %85 = vperm.xlu1 %1055, %v28_v9  }
   0xb   :  { %1044 = vmatpush.bf16.msra.mxu1 %v1034_v14  ;;  %175 = vmatpush.bf16.msra.mxu0 %v1034_v14 }
   0xc   :  { %91 = vperm.xlu2 %1056, %v30_v11   ;;  %339 = vmatpush.bf16.msra.mxu2 %v1037_v6 }
   0xf   :  { %1045 = vmatpush.bf16.msra.mxu1 %v1033_v15  ;;  %176 = vmatpush.bf16.msra.mxu0 %v1033_v15 }
  0x12   :  { %1057 = vset.pattern.permute.xlu0 %v1170_v0  ;;  %97 = vperm.xlu1 %1055, %v32_v12  }
  0x13   :  { %94 = vperm.xlu0 %1057, %v31_v13   ;;  %1046 = vmatpush.bf16.msra.mxu1 %v1032_v16 }
  0x14   :  { %1058 = vset.pattern.permute.xlu2 %v1171_v1  ;;  %177 = vmatpush.bf16.msra.mxu0 %v1032_v16 }
  0x15   :  { %38 = vperm.xlu2 %1058, %v27_v3  }
  0x17   :  { %215 = vmatpush.bf16.msrb.mxu1 %v168_v10 }
  0x1a   :  { %1059 = vset.pattern.permute.xlu1 %v1171_v1 }
  0x1b   :  { %41 = vperm.xlu1 %1059, %v28_v9   ;;  %103 = vperm.xlu0 %1057, %v34_v8   ;;  %v1036_v8 = vld [vmem:[%s1480_s2 + $0x8] sm:$0xff] }
  0x1c   :  { %216 = vmatpush.bf16.msrb.mxu1 %v1034_v14  ;;  %340 = vmatpush.bf16.msra.mxu2 %v1036_v8  ;;  %v1035_v14 = vld [vmem:[%s1480_s2] sm:$0xff] }
  0x1d   :  { %1060 = vset.pattern.permute.xlu2 %v1170_v0 }
  0x1e   :  { %100 = vperm.xlu2 %1060, %v33_v2  }
  0x20   :  { %217 = vmatpush.bf16.msrb.mxu1 %v1033_v15  ;;  %341 = vmatpush.bf16.msra.mxu2 %v1035_v14  ;;  %v1287_v15 = vld [vmem:[%s1482_s4 + $0x8] sm:$0xff] }
  0x21   :  { %446 = vmatpush.bf16.msra.mxu3 %v1287_v15  ;;  %678 = vmatpush.bf16.msrb.mxu0 %v1287_v15 }
  0x23   :  { %44 = vperm.xlu1 %1059, %v29_v4   ;;  %1062 = vset.pattern.permute.xlu0 %v1171_v1 }
  0x24   :  { %50 = vperm.xlu0 %1062, %v31_v13   ;;  %218 = vmatpush.bf16.msrb.mxu1 %v1032_v16 }
  0x25   :  { %388 = vmatpush.bf16.msrb.mxu2 %v1287_v15 }
  0x26   :  { %1061 = vset.pattern.permute.xlu2 %v1171_v1 }
  0x27   :  { %47 = vperm.xlu2 %1061, %v30_v11  }
  0x2b   :  { %53 = vperm.xlu1 %1059, %v32_v12  }
  0x2c   :  { %1103 = vset.pattern.permute.xlu0 %v1170_v0 }
  0x5e   :  { %v89_v17 = vpop.permute.xlu2 %88 }
  0x5f   :  { %vm107_vm10 = vcmp.eq.s32.totalorder %v89_v17, %v36_v21 }
  0x60   :  { %v115_v44 = vsel %vm107_vm10, 1.0, %v1172_v25 }
  0x66   :  { %v92_v22 = vpop.permute.xlu2 %91 }
  0x67   :  { %vm108_vm11 = vcmp.eq.s32.totalorder %v92_v22, %v36_v21 }
  0x68   :  { %v116_v45 = vsel %vm108_vm11, 1.0, %v1172_v25 }
  0x69   :  { %v122_v46 = vpack.c.bf16 %v116_v45, %v115_v44 }
  0x6f   :  { %v39_v29 = vpop.permute.xlu2 %38 }
  0x70   :  { %vm61_vm6 = vcmp.eq.s32.totalorder %v39_v29, %v36_v21 }
  0x71   :  { %v69_v36 = vsel %vm61_vm6, 1.0, %v1172_v25 }
  0x74   :  { %v57_v19 = vpop.permute.xlu0 %56  ;;  %v83_v20 = vpop.permute.xlu1 %82 }
  0x75   :  { %vm67_vm1 = vcmp.eq.s32.totalorder %v57_v19, %v36_v21  ;;  %vm105_vm4 = vcmp.eq.s32.totalorder %v83_v20, %v36_v21 }
  0x76   :  { %v75_v26 = vsel %vm67_vm1, 1.0, %v1172_v25  ;;  %v113_v34 = vsel %vm105_vm4, 1.0, %v1172_v25 }
  0x78   :  { %v101_v32 = vpop.permute.xlu2 %100 }
  0x79   :  { %vm111_vm7 = vcmp.eq.s32.totalorder %v101_v32, %v36_v21 }
  0x7a   :  { %v119_v33 = vsel %vm111_vm7, 1.0, %v1172_v25 }
  0x7c   :  { %v60_v23 = vpop.permute.xlu0 %59  ;;  %v86_v24 = vpop.permute.xlu1 %85 }
  0x7d   :  { %vm68_vm2 = vcmp.eq.s32.totalorder %v60_v23, %v36_v21  ;;  %vm106_vm5 = vcmp.eq.s32.totalorder %v86_v24, %v36_v21 }
  0x7e   :  { %v76_v27 = vsel %vm68_vm2, 1.0, %v1172_v25  ;;  %v114_v35 = vsel %vm106_vm5, 1.0, %v1172_v25  ;;  %vm272_vm2 = vcmask 261120  }
  0x7f   :  { %v80_v28 = vpack.c.bf16 %v76_v27, %v75_v26  ;;  %v121_v39 = vpack.c.bf16 %v114_v35, %v113_v34 }
  0x81   :  { %972 = vmatmul.msk.bf16.vlgmr.msra.gmra.mxu1 %vm153_vm3, %v80_v28  ;;  %v48_v47 = vpop.permute.xlu2 %47 }
  0x82   :  { %vm64_vm12 = vcmp.eq.s32.totalorder %v48_v47, %v36_v21  ;;  %736 = vmatpush.bf16.msra.mxu1 %v1287_v15 }
  0x83   :  { %v72_v49 = vsel %vm64_vm12, 1.0, %v1172_v25 }
  0x84   :  { %v98_v30 = vpop.permute.xlu1 %97 }
  0x85   :  { %v95_v31 = vpop.permute.xlu0 %94  ;;  %vm110_vm14 = vcmp.eq.s32.totalorder %v98_v30, %v36_v21 }
  0x86   :  { %vm109_vm15 = vcmp.eq.s32.totalorder %v95_v31, %v36_v21  ;;  %v118_v54 = vsel %vm110_vm14, 1.0, %v1172_v25 }
  0x87   :  { %v117_v55 = vsel %vm109_vm15, 1.0, %v1172_v25 }
  0x88   :  { %v123_v56 = vpack.c.bf16 %v118_v54, %v117_v55  ;;  %v1336_v55 = vld [vmem:[%s1481_s3] ss:$0 sm:$0xff]  ;;  %s1174_s3 = smov 64  }
  0x8d   :  { %v42_v37 = vpop.permute.xlu1 %41  ;;  %v104_v38 = vpop.permute.xlu0 %103 }
  0x8e   :  { %vm62_vm8 = vcmp.eq.s32.totalorder %v42_v37, %v36_v21  ;;  %vm112_vm9 = vcmp.eq.s32.totalorder %v104_v38, %v36_v21 }
  0x8f   :  { %v70_v40 = vsel %vm62_vm8, 1.0, %v1172_v25  ;;  %v120_v41 = vsel %vm112_vm9, 1.0, %v1172_v25 }
  0x90   :  { %v77_v42 = vpack.c.bf16 %v70_v40, %v69_v36  ;;  %v124_v43 = vpack.c.bf16 %v120_v41, %v119_v33 }
  0x91   :  { %973 = vmatmul.msk.bf16.vlgmr.msrb.gmra.mxu1 %vm153_vm3, %v121_v39 }
  0x92   :  { %969 = vmatmul.msk.bf16.vlgmr.msra.gmra.mxu0 %vm153_vm3, %v77_v42 }
  0x95   :  { %v45_v48 = vpop.permute.xlu1 %44 }
  0x96   :  { %vm63_vm13 = vcmp.eq.s32.totalorder %v45_v48, %v36_v21  ;;  %v51_v52 = vpop.permute.xlu0 %50 }
  0x97   :  { %v71_v50 = vsel %vm63_vm13, 1.0, %v1172_v25  ;;  %vm65_vm0 = vcmp.eq.s32.totalorder %v51_v52, %v36_v21 }
  0x98   :  { %v78_v51 = vpack.c.bf16 %v72_v49, %v71_v50  ;;  %v73_v57 = vsel %vm65_vm0, 1.0, %v1172_v25 }
  0x9d   :  { %v54_v53 = vpop.permute.xlu1 %53 }
  0x9e   :  { %vm66_vm1 = vcmp.eq.s32.totalorder %v54_v53, %v36_v21 }
  0x9f   :  { %v74_v58 = vsel %vm66_vm1, 1.0, %v1172_v25  ;;  %v1299_v25 = vld [vmem:[%s1482_s4] sm:$0xff] }
  0xa0   :  { %v79_v59 = vpack.c.bf16 %v74_v58, %v73_v57  ;;  %389 = vmatpush.bf16.msrb.mxu2 %v1299_v25  ;;  %447 = vmatpush.bf16.msra.mxu3 %v1299_v25 }
  0xa1   :  { %974 = vmatmul.msk.bf16.gmra.mxu1 %vm153_vm3, %v122_v46  ;;  %679 = vmatpush.bf16.msrb.mxu0 %v1299_v25 }
  0xa2   :  { %970 = vmatmul.msk.bf16.gmra.mxu0 %vm153_vm3, %v78_v51  ;;  %737 = vmatpush.bf16.msra.mxu1 %v1299_v25 }
  0xa4   :  { %504 = vmatpush.bf16.msrb.mxu3 %v1287_v15 }
  0xa8   :  { %505 = vmatpush.bf16.msrb.mxu3 %v1299_v25 }
  0xb1   :  { %975 = vmatmul.msk.bf16.gmra.mxu1 %vm153_vm3, %v123_v56 }
  0xb2   :  { %971 = vmatmul.msk.bf16.gmra.mxu0 %vm153_vm3, %v79_v59 }
  0xc1   :  { %976 = vmatmul.msk.bf16.gmra.mxu1 %vm153_vm3, %v124_v43  ;;  %vm321_vm3 = vcmask 523264  }
  0xfe   :  { %v1264_v60 = vpop.f32.mrf.mxu1 }
 0x106   :  { %v1266_v61 = vpop.f32.mrf.mxu1 }
 0x10e   :  { %v220_v62 = vpop.f32.mrf.mxu1 }
 0x10f   :  { %v179_v16 = vpop.f32.mrf.mxu0 }
 0x116   :  { %v222_v63 = vpop.f32.mrf.mxu1 }
 0x117   :  { %v1063_v0 = vpack.i.bf16 %v222_v63, %v220_v62  ;;  %v181_v20 = vpop.f32.mrf.mxu0 }
 0x119   :  { %1064 = vrot.lane.b32.xlu2 %v1063_v0, %s1173_s1 }
 0x11e   :  { %v225_v2 = vpop.f32.mrf.mxu1 }
 0x11f   :  { %v184_v24 = vpop.f32.mrf.mxu0 }
 0x126   :  { %v227_v3 = vpop.f32.mrf.mxu1 }
 0x127   :  { %v1068_v4 = vpack.i.bf16 %v227_v3, %v225_v2  ;;  %v186_v26 = vpop.f32.mrf.mxu0 }
 0x129   :  { %1069 = vrot.lane.b32.xlu1 %v1068_v4, %s1173_s1 }
 0x12e   :  { %v230_v7 = vpop.f32.mrf.mxu1 }
 0x12f   :  { %v189_v33 = vpop.f32.mrf.mxu0 }
 0x136   :  { %v232_v9 = vpop.f32.mrf.mxu1 }
 0x137   :  { %v1073_v10 = vpack.i.bf16 %v232_v9, %v230_v7  ;;  %v191_v37 = vpop.f32.mrf.mxu0 }
 0x139   :  { %1074 = vrot.lane.b32.xlu2 %v1073_v10, %s1173_s1 }
 0x13e   :  { %v235_v11 = vpop.f32.mrf.mxu1 }
 0x146   :  { %v237_v12 = vpop.f32.mrf.mxu1 }
 0x147   :  { %v1078_v13 = vpack.i.bf16 %v237_v12, %v235_v11 }
 0x149   :  { %1079 = vrot.lane.b32.xlu0 %v1078_v13, %s1173_s1 }
 0x173   :  { %v1065_v17 = vpop.permute.xlu2 %1064 }
 0x174   :  { %v1067_v18 = vunpack.i.h.bf16 %v1065_v17  ;;  %v1066_v19 = vunpack.i.l.bf16 %v1065_v17 }
 0x176   :  { %v273_v21 = vsel %vm272_vm2, %v179_v16, %v1066_v19  ;;  %v274_v22 = vsel %vm272_vm2, %v181_v20, %v1067_v18 }
 0x177   :  { %v281_v23 = vpack.c.bf16 %v274_v22, %v273_v21 }
 0x179   :  { %993 = vmatmul.msk.bf16.vlgmr.msra.gmra.mxu2 %vm321_vm3, %v281_v23 }
 0x17a   :  { %794 = vmatpush.bf16.msra.mxu2 %v1287_v15 }
 0x17e   :  { %795 = vmatpush.bf16.msra.mxu2 %v1299_v25 }
 0x193   :  { %v1075_v34 = vpop.permute.xlu2 %1074 }
 0x194   :  { %v1077_v35 = vunpack.i.h.bf16 %v1075_v34  ;;  %v1076_v36 = vunpack.i.l.bf16 %v1075_v34 }
 0x196   :  { %v277_v38 = vsel %vm272_vm2, %v189_v33, %v1076_v36  ;;  %v278_v39 = vsel %vm272_vm2, %v191_v37, %v1077_v35 }
 0x197   :  { %v283_v40 = vpack.c.bf16 %v278_v39, %v277_v38 }
 0x19b   :  { %v1070_v27 = vpop.permute.xlu1 %1069 }
 0x19c   :  { %v1072_v28 = vunpack.i.h.bf16 %v1070_v27  ;;  %v1071_v29 = vunpack.i.l.bf16 %v1070_v27 }
 0x19e   :  { %v275_v30 = vsel %vm272_vm2, %v184_v24, %v1071_v29  ;;  %v276_v31 = vsel %vm272_vm2, %v186_v26, %v1072_v28 }
 0x19f   :  { %v282_v32 = vpack.c.bf16 %v276_v31, %v275_v30 }
 0x1a1   :  { %994 = vmatmul.msk.bf16.gmra.mxu2 %vm321_vm3, %v282_v32 }
 0x1b1   :  { %995 = vmatmul.msk.bf16.gmra.mxu2 %vm321_vm3, %v283_v40 }
 0x1bb   :  { %v1080_v41 = vpop.permute.xlu0 %1079 }
 0x1bc   :  { %v1082_v42 = vunpack.i.h.bf16 %v1080_v41  ;;  %v1081_v43 = vunpack.i.l.bf16 %v1080_v41 }
 0x1be   :  { %v279_v44 = vsel %vm272_vm2, %v1264_v60, %v1081_v43  ;;  %v280_v45 = vsel %vm272_vm2, %v1266_v61, %v1082_v42 }
 0x1bf   :  { %v284_v46 = vpack.c.bf16 %v280_v45, %v279_v44 }
 0x1c1   :  { %996 = vmatmul.msk.bf16.gmra.mxu2 %vm321_vm3, %v284_v46 }
 0x1d1   :  { %390 = vmatmul.bf16.vlgmr.msrb.gmra.mxu2 %v1171_v1 }
 0x1fc   :  { %v343_v47 = vpop.f32.mrf.mxu2 }
 0x1fd   :  { %v344_v1 = vadd.f32 %v1336_v55, %v343_v47 }
 0x204   :  { %v345_v48 = vpop.f32.mrf.mxu2 }
 0x205   :  { %v346_v21 = vadd.f32 %v1336_v55, %v345_v48 }
 0x224   :  { %v1321_v49 = vpop.f32.mrf.mxu2 }
 0x22c   :  { %v1323_v50 = vpop.f32.mrf.mxu2 }
 0x234   :  { %v1325_v51 = vpop.f32.mrf.mxu2 }
 0x23c   :  { %v1327_v52 = vpop.f32.mrf.mxu2 }
 0x244   :  { %v1329_v53 = vpop.f32.mrf.mxu2 }
 0x24c   :  { %v1331_v54 = vpop.f32.mrf.mxu2 }
 0x254   :  { %v391_v56 = vpop.f32.mrf.mxu2 }
 0x255   :  { %v395_v57 = vadd.f32 %v391_v56, %v344_v1  ;;  %v349_v56 = vadd.f32 %v1336_v55, %v1321_v49 }
 0x257   :  { %1106 = vtanh.f32 %v395_v57  ;;  %v1005_v60 = vmul.f32 -1.442695, %v395_v57 }
 0x259   :  { %1108 = vpow2.f32 %v1005_v60 }
 0x25c   :  { %v393_v58 = vpop.f32.mrf.mxu2 }
 0x25d   :  { %v1107_v59 = vpop.eup %1106 }
 0x25e   :  { %418 = vrot.lane.b32.xlu1 %v1107_v59, %s1173_s1 }
 0x25f   :  { %v1109_v61 = vpop.eup %1108 }
 0x260   :  { %v399_v62 = vadd.f32 1.0, %v1109_v61 }
 0x262   :  { %1110 = vrcp.f32 %v399_v62  ;;  %v411_v5 = vand.u32 2147483648, %v399_v62  ;;  %vm405_vm5 = vweird.f32 %v399_v62  ;;  %v409_v6 = vand.u32 2147483647, %v399_v62 }
 0x264   :  { %v412_v8 = vor.u32 1.1754944e-38, %v411_v5  ;;  %vm410_vm7 = vcmp.eq.f32.partialorder %v409_v6, 8.507059e+37 }
 0x268   :  { %v1111_v63 = vpop.eup %1110 }
 0x269   :  { %v401_v0 = vmul.f32 %v1111_v63, %v399_v62  ;;  %vm406_vm4 = vweird.f32 %v1111_v63 }
 0x26a   :  { %vm407_vm6 = vmor %vm405_vm5, %vm406_vm4 }
 0x26b   :  { %v402_v2 = vsub.f32 1.0, %v401_v0 }
 0x26d   :  { %v403_v3 = vmul.f32 %v1111_v63, %v402_v2 }
 0x26f   :  { %v404_v4 = vadd.f32 %v1111_v63, %v403_v3 }
 0x271   :  { %v408_v7 = vsel %vm407_vm6, %v1111_v63, %v404_v4 }
 0x272   :  { %v413_v10 = vsel %vm410_vm7, %v412_v8, %v408_v7 }
 0x273   :  { %v416_v12 = vmul.f32 0.0, %v413_v10 }
 0x2d0   :  { %v419_v9 = vpop.permute.xlu1 %418 }
 0x2d1   :  { %v421_v11 = vmul.f32 %v419_v9, %v413_v10 }
 0x2d3   :  { %423 = vrot.lane.b32.xlu2 %v421_v11, %s1173_s1 }
 0x32d   :  { %v424_v13 = vpop.permute.xlu2 %423 }
 0x32e   :  { %v426_v14 = vadd.f32 %v424_v13, %v416_v12 }
 0x330   :  { %1112 = vtanh.f32 %v426_v14 }
 0x336   :  { %v1113_v16 = vpop.eup %1112 }
 0x337   :  { %429 = vrot.lane.b32.xlu0 %v1113_v16, %s1173_s1 }
 0x3a9   :  { %v430_v17 = vpop.permute.xlu0 %429 }
 0x3aa   :  { %v1342_v18 = vmul.f32 %v430_v17, %v413_v10 }
 0x3ac   :  { %v433_v19 = vpack.c.bf16 %v1342_v18, %v1342_v18 }
 0x3ae   :  { %435 = vrot.lane.b32.xlu1 %v433_v19, %s1174_s3 }
 0x420   :  { %v436_v20 = vpop.permute.xlu1 %435 }
 0x421   :  { %1006 = vmatmul.msk.bf16.vlgmr.msra.gmra.mxu3 %vm272_vm2, %v436_v20  ;;  %v351_v20 = vadd.f32 %v1336_v55, %v1323_v50 }
 0x422   :  { %562 = vmatpush.bf16.msra.mxu3 %v1287_v15 }
 0x426   :  { %563 = vmatpush.bf16.msra.mxu3 %v1299_v25 }
 0x4a4   :  { %v449_v22 = vpop.f32.mrf.mxu3 }
 0x4a5   :  { %v453_v23 = vadd.f32 %v449_v22, %v346_v21 }
 0x4a7   :  { %1114 = vtanh.f32 %v453_v23  ;;  %v1007_v27 = vmul.f32 -1.442695, %v453_v23 }
 0x4a9   :  { %1116 = vpow2.f32 %v1007_v27 }
 0x4ac   :  { %v451_v24 = vpop.f32.mrf.mxu3 }
 0x4ad   :  { %v1115_v26 = vpop.eup %1114 }
 0x4ae   :  { %476 = vrot.lane.b32.xlu2 %v1115_v26, %s1173_s1 }
 0x4af   :  { %v1117_v28 = vpop.eup %1116 }
 0x4b0   :  { %v457_v29 = vadd.f32 1.0, %v1117_v28 }
 0x4b2   :  { %1118 = vrcp.f32 %v457_v29  ;;  %v469_v35 = vand.u32 2147483648, %v457_v29  ;;  %vm463_vm9 = vweird.f32 %v457_v29  ;;  %v467_v36 = vand.u32 2147483647, %v457_v29 }
 0x4b4   :  { %v470_v38 = vor.u32 1.1754944e-38, %v469_v35  ;;  %vm468_vm11 = vcmp.eq.f32.partialorder %v467_v36, 8.507059e+37 }
 0x4b8   :  { %v1119_v30 = vpop.eup %1118 }
 0x4b9   :  { %v459_v31 = vmul.f32 %v1119_v30, %v457_v29  ;;  %vm464_vm8 = vweird.f32 %v1119_v30 }
 0x4ba   :  { %vm465_vm10 = vmor %vm463_vm9, %vm464_vm8 }
 0x4bb   :  { %v460_v32 = vsub.f32 1.0, %v459_v31 }
 0x4bd   :  { %v461_v33 = vmul.f32 %v1119_v30, %v460_v32 }
 0x4bf   :  { %v462_v34 = vadd.f32 %v1119_v30, %v461_v33 }
 0x4c1   :  { %v466_v37 = vsel %vm465_vm10, %v1119_v30, %v462_v34 }
 0x4c2   :  { %v471_v40 = vsel %vm468_vm11, %v470_v38, %v466_v37 }
 0x4c3   :  { %v474_v42 = vmul.f32 %v471_v40, %v426_v14 }
 0x508   :  { %v477_v39 = vpop.permute.xlu2 %476 }
 0x509   :  { %v479_v41 = vmul.f32 %v477_v39, %v471_v40 }
 0x50b   :  { %481 = vrot.lane.b32.xlu0 %v479_v41, %s1173_s1 }
 0x57d   :  { %v482_v43 = vpop.permute.xlu0 %481 }
 0x57e   :  { %v484_v44 = vadd.f32 %v482_v43, %v474_v42 }
 0x580   :  { %1120 = vtanh.f32 %v484_v44 }
 0x586   :  { %v1121_v45 = vpop.eup %1120 }
 0x587   :  { %487 = vrot.lane.b32.xlu1 %v1121_v45, %s1173_s1 }
 0x5f9   :  { %v488_v46 = vpop.permute.xlu1 %487 }
 0x5fa   :  { %v1354_v47 = vmul.f32 %v488_v46, %v471_v40 }
 0x5fc   :  { %v491_v48 = vpack.c.bf16 %v1354_v47, %v1354_v47 }
 0x5fe   :  { %493 = vrot.lane.b32.xlu2 %v491_v48, %s1174_s3 }
 0x658   :  { %v494_v1 = vpop.permute.xlu2 %493 }
 0x659   :  { %1008 = vmatmul.msk.bf16.vlgmr.msrb.gmra.mxu3 %vm272_vm2, %v494_v1  ;;  %v354_v1 = vadd.f32 %v1336_v55, %v1325_v51 }
 0x65a   :  { %620 = vmatpush.bf16.msrb.mxu3 %v1287_v15 }
 0x65e   :  { %621 = vmatpush.bf16.msrb.mxu3 %v1299_v25 }
 0x6dc   :  { %v507_v57 = vpop.f32.mrf.mxu3 }
 0x6dd   :  { %v511_v58 = vadd.f32 %v507_v57, %v349_v56 }
 0x6df   :  { %1122 = vtanh.f32 %v511_v58  ;;  %v1009_v61 = vmul.f32 -1.442695, %v511_v58 }
 0x6e1   :  { %1124 = vpow2.f32 %v1009_v61 }
 0x6e4   :  { %v509_v59 = vpop.f32.mrf.mxu3 }
 0x6e5   :  { %v1123_v60 = vpop.eup %1122 }
 0x6e6   :  { %534 = vrot.lane.b32.xlu0 %v1123_v60, %s1173_s1 }
 0x6e7   :  { %v1125_v62 = vpop.eup %1124 }
 0x6e8   :  { %v515_v63 = vadd.f32 1.0, %v1125_v62 }
 0x6ea   :  { %1126 = vrcp.f32 %v515_v63  ;;  %v527_v4 = vand.u32 2147483648, %v515_v63  ;;  %vm521_vm13 = vweird.f32 %v515_v63  ;;  %v525_v49 = vand.u32 2147483647, %v515_v63 }
 0x6ec   :  { %v528_v6 = vor.u32 1.1754944e-38, %v527_v4  ;;  %vm526_vm15 = vcmp.eq.f32.partialorder %v525_v49, 8.507059e+37 }
 0x6f0   :  { %v1127_v0 = vpop.eup %1126 }
 0x6f1   :  { %v517_v2 = vmul.f32 %v1127_v0, %v515_v63  ;;  %vm522_vm12 = vweird.f32 %v1127_v0 }
 0x6f2   :  { %vm523_vm14 = vmor %vm521_vm13, %vm522_vm12 }
 0x6f3   :  { %v518_v15 = vsub.f32 1.0, %v517_v2 }
 0x6f5   :  { %v519_v3 = vmul.f32 %v1127_v0, %v518_v15 }
 0x6f7   :  { %v520_v25 = vadd.f32 %v1127_v0, %v519_v3 }
 0x6f9   :  { %v524_v5 = vsel %vm523_vm14, %v1127_v0, %v520_v25 }
 0x6fa   :  { %v529_v8 = vsel %vm526_vm15, %v528_v6, %v524_v5 }
 0x6fb   :  { %v532_v10 = vmul.f32 %v529_v8, %v484_v44 }
 0x758   :  { %v535_v7 = vpop.permute.xlu0 %534 }
 0x759   :  { %v537_v9 = vmul.f32 %v535_v7, %v529_v8 }
 0x75b   :  { %539 = vrot.lane.b32.xlu1 %v537_v9, %s1173_s1 }
 0x7cd   :  { %v540_v11 = vpop.permute.xlu1 %539 }
 0x7ce   :  { %v542_v12 = vadd.f32 %v540_v11, %v532_v10 }
 0x7d0   :  { %1128 = vtanh.f32 %v542_v12 }
 0x7d6   :  { %v1129_v13 = vpop.eup %1128 }
 0x7d7   :  { %545 = vrot.lane.b32.xlu2 %v1129_v13, %s1173_s1 }
 0x831   :  { %v546_v14 = vpop.permute.xlu2 %545 }
 0x832   :  { %v1367_v16 = vmul.f32 %v546_v14, %v529_v8 }
 0x834   :  { %v549_v17 = vpack.c.bf16 %v1367_v16, %v1367_v16 }
 0x836   :  { %551 = vrot.lane.b32.xlu0 %v549_v17, %s1174_s3 }
 0x8a8   :  { %v552_v19 = vpop.permute.xlu0 %551 }
 0x8a9   :  { %1010 = vmatmul.msk.bf16.vlgmr.msra.gmra.mxu3 %vm272_vm2, %v552_v19  ;;  %v356_v19 = vadd.f32 %v1336_v55, %v1327_v52 }
 0x92c   :  { %v565_v21 = vpop.f32.mrf.mxu3 }
 0x92d   :  { %v569_v22 = vadd.f32 %v565_v21, %v351_v20 }
 0x92f   :  { %1130 = vtanh.f32 %v569_v22  ;;  %v1011_v26 = vmul.f32 -1.442695, %v569_v22 }
 0x931   :  { %1132 = vpow2.f32 %v1011_v26 }
 0x934   :  { %v567_v23 = vpop.f32.mrf.mxu3 }
 0x935   :  { %v1131_v24 = vpop.eup %1130 }
 0x936   :  { %592 = vrot.lane.b32.xlu1 %v1131_v24, %s1173_s1 }
 0x937   :  { %v1133_v27 = vpop.eup %1132 }
 0x938   :  { %v573_v28 = vadd.f32 1.0, %v1133_v27 }
 0x93a   :  { %1134 = vrcp.f32 %v573_v28  ;;  %v585_v34 = vand.u32 2147483648, %v573_v28  ;;  %vm579_vm1 = vweird.f32 %v573_v28  ;;  %v583_v50 = vand.u32 2147483647, %v573_v28 }
 0x93c   :  { %v586_v36 = vor.u32 1.1754944e-38, %v585_v34  ;;  %vm584_vm4 = vcmp.eq.f32.partialorder %v583_v50, 8.507059e+37 }
 0x940   :  { %v1135_v29 = vpop.eup %1134 }
 0x941   :  { %v575_v30 = vmul.f32 %v1135_v29, %v573_v28  ;;  %vm580_vm0 = vweird.f32 %v1135_v29 }
 0x942   :  { %vm581_vm3 = vmor %vm579_vm1, %vm580_vm0 }
 0x943   :  { %v576_v31 = vsub.f32 1.0, %v575_v30 }
 0x945   :  { %v577_v32 = vmul.f32 %v1135_v29, %v576_v31 }
 0x947   :  { %v578_v33 = vadd.f32 %v1135_v29, %v577_v32 }
 0x949   :  { %v582_v35 = vsel %vm581_vm3, %v1135_v29, %v578_v33 }
 0x94a   :  { %v587_v38 = vsel %vm584_vm4, %v586_v36, %v582_v35 }
 0x94b   :  { %v590_v40 = vmul.f32 %v587_v38, %v542_v12 }
 0x9a8   :  { %v593_v37 = vpop.permute.xlu1 %592 }
 0x9a9   :  { %v595_v39 = vmul.f32 %v593_v37, %v587_v38 }
 0x9ab   :  { %597 = vrot.lane.b32.xlu2 %v595_v39, %s1173_s1 }
 0xa05   :  { %v598_v41 = vpop.permute.xlu2 %597 }
 0xa06   :  { %v600_v42 = vadd.f32 %v598_v41, %v590_v40 }
 0xa08   :  { %1136 = vtanh.f32 %v600_v42 }
 0xa0e   :  { %v1137_v43 = vpop.eup %1136 }
 0xa0f   :  { %603 = vrot.lane.b32.xlu0 %v1137_v43, %s1173_s1 }
 0xa81   :  { %v604_v44 = vpop.permute.xlu0 %603 }
 0xa82   :  { %v1378_v45 = vmul.f32 %v604_v44, %v587_v38 }
 0xa84   :  { %v607_v46 = vpack.c.bf16 %v1378_v45, %v1378_v45 }
 0xa86   :  { %609 = vrot.lane.b32.xlu1 %v607_v46, %s1174_s3 }
 0xaf8   :  { %v610_v48 = vpop.permute.xlu1 %609 }
 0xaf9   :  { %1012 = vmatmul.msk.bf16.vlgmr.msrb.gmra.mxu3 %vm272_vm2, %v610_v48  ;;  %v359_v48 = vadd.f32 %v1336_v55, %v1329_v53 }
 0xb7c   :  { %v623_v56 = vpop.f32.mrf.mxu3 }
 0xb7d   :  { %v627_v57 = vadd.f32 %v623_v56, %v354_v1 }
 0xb7f   :  { %1138 = vtanh.f32 %v627_v57  ;;  %v1013_v60 = vmul.f32 -1.442695, %v627_v57 }
 0xb81   :  { %1140 = vpow2.f32 %v1013_v60 }
 0xb84   :  { %v625_v58 = vpop.f32.mrf.mxu3 }
 0xb85   :  { %v1139_v59 = vpop.eup %1138 }
 0xb86   :  { %650 = vrot.lane.b32.xlu2 %v1139_v59, %s1173_s1 }
 0xb87   :  { %v1141_v61 = vpop.eup %1140 }
 0xb88   :  { %v631_v62 = vadd.f32 1.0, %v1141_v61 }
 0xb8a   :  { %1142 = vrcp.f32 %v631_v62  ;;  %v643_v25 = vand.u32 2147483648, %v631_v62  ;;  %vm637_vm6 = vweird.f32 %v631_v62  ;;  %v641_v51 = vand.u32 2147483647, %v631_v62 }
 0xb8c   :  { %v644_v49 = vor.u32 1.1754944e-38, %v643_v25  ;;  %vm642_vm8 = vcmp.eq.f32.partialorder %v641_v51, 8.507059e+37 }
 0xb90   :  { %v1143_v63 = vpop.eup %1142 }
 0xb91   :  { %v633_v0 = vmul.f32 %v1143_v63, %v631_v62  ;;  %vm638_vm5 = vweird.f32 %v1143_v63 }
 0xb92   :  { %vm639_vm7 = vmor %vm637_vm6, %vm638_vm5  ;;  %vm871_vm6 = vcmask 130048  }
 0xb93   :  { %v634_v2 = vsub.f32 1.0, %v633_v0 }
 0xb95   :  { %v635_v15 = vmul.f32 %v1143_v63, %v634_v2 }
 0xb97   :  { %v636_v3 = vadd.f32 %v1143_v63, %v635_v15 }
 0xb99   :  { %v640_v4 = vsel %vm639_vm7, %v1143_v63, %v636_v3 }
 0xb9a   :  { %v645_v6 = vsel %vm642_vm8, %v644_v49, %v640_v4 }
 0xb9b   :  { %v648_v8 = vmul.f32 %v645_v6, %v600_v42 }
 0xbe0   :  { %v651_v5 = vpop.permute.xlu2 %650 }
 0xbe1   :  { %v653_v7 = vmul.f32 %v651_v5, %v645_v6 }
 0xbe3   :  { %655 = vrot.lane.b32.xlu0 %v653_v7, %s1173_s1 }
 0xc55   :  { %v656_v9 = vpop.permute.xlu0 %655 }
 0xc56   :  { %v658_v10 = vadd.f32 %v656_v9, %v648_v8 }
 0xc58   :  { %1144 = vtanh.f32 %v658_v10 }
 0xc5e   :  { %v1145_v11 = vpop.eup %1144 }
 0xc5f   :  { %661 = vrot.lane.b32.xlu1 %v1145_v11, %s1173_s1 }
 0xcd1   :  { %v662_v12 = vpop.permute.xlu1 %661 }
 0xcd2   :  { %v1389_v13 = vmul.f32 %v662_v12, %v645_v6 }
 0xcd4   :  { %v665_v14 = vpack.c.bf16 %v1389_v13, %v1389_v13 }
 0xcd6   :  { %667 = vrot.lane.b32.xlu2 %v665_v14, %s1174_s3 }
 0xd30   :  { %v668_v17 = vpop.permute.xlu2 %667 }
 0xd31   :  { %1014 = vmatmul.msk.bf16.vlgmr.msrb.gmra.mxu0 %vm272_vm2, %v668_v17  ;;  %v361_v17 = vadd.f32 %v1336_v55, %v1331_v54 }
 0xdae   :  { %v681_v20 = vpop.f32.mrf.mxu0 }
 0xdaf   :  { %v685_v21 = vadd.f32 %v681_v20, %v356_v19 }
 0xdb1   :  { %1146 = vtanh.f32 %v685_v21  ;;  %v1015_v24 = vmul.f32 -1.442695, %v685_v21 }
 0xdb3   :  { %1148 = vpow2.f32 %v1015_v24 }
 0xdb6   :  { %v683_v22 = vpop.f32.mrf.mxu0 }
 0xdb7   :  { %v1147_v23 = vpop.eup %1146 }
 0xdb8   :  { %708 = vrot.lane.b32.xlu0 %v1147_v23, %s1173_s1  ;;  %v1083_v23 = vpack.i.bf16 %v1378_v45, %v1367_v16 }
 0xdb9   :  { %v1149_v26 = vpop.eup %1148 }
 0xdba   :  { %v689_v27 = vadd.f32 1.0, %v1149_v26 }
 0xdbc   :  { %1150 = vrcp.f32 %v689_v27  ;;  %v701_v33 = vand.u32 2147483648, %v689_v27  ;;  %vm695_vm10 = vweird.f32 %v689_v27  ;;  %v699_v52 = vand.u32 2147483647, %v689_v27 }
 0xdbe   :  { %v702_v50 = vor.u32 1.1754944e-38, %v701_v33  ;;  %vm700_vm12 = vcmp.eq.f32.partialorder %v699_v52, 8.507059e+37 }
 0xdc2   :  { %v1151_v28 = vpop.eup %1150 }
 0xdc3   :  { %v691_v29 = vmul.f32 %v1151_v28, %v689_v27  ;;  %vm696_vm9 = vweird.f32 %v1151_v28 }
 0xdc4   :  { %vm697_vm11 = vmor %vm695_vm10, %vm696_vm9 }
 0xdc5   :  { %v692_v30 = vsub.f32 1.0, %v691_v29 }
 0xdc7   :  { %v693_v31 = vmul.f32 %v1151_v28, %v692_v30 }
 0xdc9   :  { %v694_v32 = vadd.f32 %v1151_v28, %v693_v31 }
 0xdcb   :  { %v698_v34 = vsel %vm697_vm11, %v1151_v28, %v694_v32 }
 0xdcc   :  { %v703_v36 = vsel %vm700_vm12, %v702_v50, %v698_v34 }
 0xdcd   :  { %v706_v38 = vmul.f32 %v703_v36, %v658_v10 }
 0xe2a   :  { %v709_v35 = vpop.permute.xlu0 %708 }
 0xe2b   :  { %v711_v37 = vmul.f32 %v709_v35, %v703_v36  ;;  %v1042_v35 = vld [vmem:[%s1483_s5 + $0x8] sm:$0xff] }
 0xe2c   :  { %1047 = vmatpush.bf16.msra.mxu3 %v1042_v35  ;;  %922 = vmatpush.bf16.msra.mxu0 %v1042_v35 }
 0xe2d   :  { %713 = vrot.lane.b32.xlu1 %v711_v37, %s1173_s1 }
 0xe9f   :  { %v714_v39 = vpop.permute.xlu1 %713 }
 0xea0   :  { %v716_v40 = vadd.f32 %v714_v39, %v706_v38 }
 0xea2   :  { %1152 = vtanh.f32 %v716_v40 }
 0xea8   :  { %v1153_v41 = vpop.eup %1152 }
 0xea9   :  { %719 = vrot.lane.b32.xlu2 %v1153_v41, %s1173_s1 }
 0xf03   :  { %v720_v42 = vpop.permute.xlu2 %719 }
 0xf04   :  { %v1400_v43 = vmul.f32 %v720_v42, %v703_v36  ;;  %v1041_v36 = vld [vmem:[%s1483_s5] sm:$0xff] }
 0xf05   :  { %1048 = vmatpush.bf16.msra.mxu3 %v1041_v36  ;;  %923 = vmatpush.bf16.msra.mxu0 %v1041_v36 }
 0xf06   :  { %v723_v44 = vpack.c.bf16 %v1400_v43, %v1400_v43  ;;  %v1088_v50 = vpack.i.bf16 %v1400_v43, %v1389_v13 }
 0xf08   :  { %725 = vrot.lane.b32.xlu0 %v723_v44, %s1174_s3 }
 0xf7a   :  { %v726_v46 = vpop.permute.xlu0 %725 }
 0xf7b   :  { %1016 = vmatmul.msk.bf16.vlgmr.msra.gmra.mxu1 %vm272_vm2, %v726_v46 }
 0xff8   :  { %v739_v1 = vpop.f32.mrf.mxu1 }
 0xff9   :  { %v743_v56 = vadd.f32 %v739_v1, %v359_v48 }
 0xffb   :  { %1154 = vtanh.f32 %v743_v56  ;;  %v1017_v59 = vmul.f32 -1.442695, %v743_v56 }
 0xffd   :  { %1156 = vpow2.f32 %v1017_v59 }
0x1000   :  { %v741_v57 = vpop.f32.mrf.mxu1 }
0x1001   :  { %v1155_v58 = vpop.eup %1154 }
0x1002   :  { %766 = vrot.lane.b32.xlu1 %v1155_v58, %s1173_s1 }
0x1003   :  { %v1157_v60 = vpop.eup %1156 }
0x1004   :  { %v747_v61 = vadd.f32 1.0, %v1157_v60  ;;  %v1093_v60 = vpack.i.bf16 %v1354_v47, %v1342_v18 }
0x1006   :  { %1158 = vrcp.f32 %v747_v61  ;;  %v759_v3 = vand.u32 2147483648, %v747_v61  ;;  %vm753_vm14 = vweird.f32 %v747_v61  ;;  %v757_v53 = vand.u32 2147483647, %v747_v61 }
0x1008   :  { %v760_v51 = vor.u32 1.1754944e-38, %v759_v3  ;;  %vm758_vm0 = vcmp.eq.f32.partialorder %v757_v53, 8.507059e+37 }
0x100c   :  { %v1159_v62 = vpop.eup %1158 }
0x100d   :  { %v749_v63 = vmul.f32 %v1159_v62, %v747_v61  ;;  %vm754_vm13 = vweird.f32 %v1159_v62 }
0x100e   :  { %vm755_vm15 = vmor %vm753_vm14, %vm754_vm13 }
0x100f   :  { %v750_v0 = vsub.f32 1.0, %v749_v63 }
0x1011   :  { %v751_v2 = vmul.f32 %v1159_v62, %v750_v0  ;;  %v1105_v0 = vld [vmem:[%s1484_s6] ss:$0 sm:$0xff] }
0x1013   :  { %v752_v15 = vadd.f32 %v1159_v62, %v751_v2 }
0x1015   :  { %v756_v25 = vsel %vm755_vm15, %v1159_v62, %v752_v15 }
0x1016   :  { %v761_v49 = vsel %vm758_vm0, %v760_v51, %v756_v25 }
0x1017   :  { %v764_v6 = vmul.f32 %v761_v49, %v716_v40 }
0x1074   :  { %v767_v4 = vpop.permute.xlu1 %766 }
0x1075   :  { %v769_v5 = vmul.f32 %v767_v4, %v761_v49 }
0x1077   :  { %771 = vrot.lane.b32.xlu2 %v769_v5, %s1173_s1 }
0x10d1   :  { %v772_v7 = vpop.permute.xlu2 %771 }
0x10d2   :  { %v774_v8 = vadd.f32 %v772_v7, %v764_v6 }
0x10d4   :  { %1160 = vtanh.f32 %v774_v8 }
0x10da   :  { %v1161_v9 = vpop.eup %1160 }
0x10db   :  { %777 = vrot.lane.b32.xlu0 %v1161_v9, %s1173_s1 }
0x114d   :  { %v778_v10 = vpop.permute.xlu0 %777 }
0x114e   :  { %v1411_v11 = vmul.f32 %v778_v10, %v761_v49 }
0x1150   :  { %v781_v12 = vpack.c.bf16 %v1411_v11, %v1411_v11 }
0x1152   :  { %783 = vrot.lane.b32.xlu1 %v781_v12, %s1174_s3 }
0x11c4   :  { %v784_v14 = vpop.permute.xlu1 %783 }
0x11c5   :  { %1018 = vmatmul.msk.bf16.vlgmr.msra.gmra.mxu2 %vm272_vm2, %v784_v14 }
0x1248   :  { %v797_v19 = vpop.f32.mrf.mxu2 }
0x1249   :  { %v801_v20 = vadd.f32 %v797_v19, %v361_v17 }
0x124b   :  { %1162 = vtanh.f32 %v801_v20  ;;  %v1019_v24 = vmul.f32 -1.442695, %v801_v20 }
0x124d   :  { %1164 = vpow2.f32 %v1019_v24 }
0x1250   :  { %v799_v21 = vpop.f32.mrf.mxu2 }
0x1251   :  { %v1163_v22 = vpop.eup %1162 }
0x1252   :  { %824 = vrot.lane.b32.xlu2 %v1163_v22, %s1173_s1 }
0x1253   :  { %v1165_v26 = vpop.eup %1164 }
0x1254   :  { %v805_v27 = vadd.f32 1.0, %v1165_v26 }
0x1256   :  { %1166 = vrcp.f32 %v805_v27  ;;  %v817_v31 = vand.u32 2147483648, %v805_v27  ;;  %vm811_vm3 = vweird.f32 %v805_v27  ;;  %v815_v32 = vand.u32 2147483647, %v805_v27 }
0x1258   :  { %v818_v52 = vor.u32 1.1754944e-38, %v817_v31  ;;  %vm816_vm5 = vcmp.eq.f32.partialorder %v815_v32, 8.507059e+37 }
0x125a   :  { %1084 = vrot.lane.b32.xlu2 %v1083_v23, %s1174_s3 }
0x125c   :  { %v1167_v28 = vpop.eup %1166 }
0x125d   :  { %v807_v29 = vmul.f32 %v1167_v28, %v805_v27  ;;  %vm812_vm1 = vweird.f32 %v1167_v28 }
0x125e   :  { %vm813_vm4 = vmor %vm811_vm3, %vm812_vm1 }
0x125f   :  { %v808_v54 = vsub.f32 1.0, %v807_v29 }
0x1261   :  { %v809_v55 = vmul.f32 %v1167_v28, %v808_v54 }
0x1263   :  { %v810_v30 = vadd.f32 %v1167_v28, %v809_v55 }
0x1265   :  { %v814_v33 = vsel %vm813_vm4, %v1167_v28, %v810_v30 }
0x1266   :  { %v819_v45 = vsel %vm816_vm5, %v818_v52, %v814_v33 }
0x1267   :  { %v822_v37 = vmul.f32 %v819_v45, %v774_v8 }
0x12ac   :  { %v825_v16 = vpop.permute.xlu2 %824 }
0x12ad   :  { %v827_v34 = vmul.f32 %v825_v16, %v819_v45 }
0x12af   :  { %829 = vrot.lane.b32.xlu0 %v827_v34, %s1173_s1 }
0x12b4   :  { %v1085_v40 = vpop.permute.xlu2 %1084 }
0x12b5   :  { %v1087_v42 = vunpack.i.h.bf16 %v1085_v40  ;;  %v1086_v43 = vunpack.i.l.bf16 %v1085_v40 }
0x12b7   :  { %1089 = vrot.lane.b32.xlu0 %v1088_v50, %s1174_s3 }
0x1321   :  { %v830_v38 = vpop.permute.xlu0 %829 }
0x1322   :  { %v832_v39 = vadd.f32 %v830_v38, %v822_v37 }
0x1324   :  { %1168 = vtanh.f32 %v832_v39 }
0x1329   :  { %v1090_v13 = vpop.permute.xlu0 %1089 }
0x132a   :  { %v1169_v41 = vpop.eup %1168  ;;  %v1092_v44 = vunpack.i.h.bf16 %v1090_v13  ;;  %v1091_v46 = vunpack.i.l.bf16 %v1090_v13 }
0x132b   :  { %835 = vrot.lane.b32.xlu1 %v1169_v41, %s1173_s1 }
0x132c   :  { %v877_v48 = vsel %vm871_vm6, %v1092_v44, %v1086_v43  ;;  %v876_v1 = vsel %vm871_vm6, %v1091_v46, %v1087_v42  ;;  %v874_v56 = vsel %vm871_vm6, %v1086_v43, %v1092_v44  ;;  %v875_v57 = vsel %vm871_vm6, %v1087_v42, %v1091_v46 }
0x132d   :  { %v882_v58 = vpack.c.bf16 %v877_v48, %v876_v1  ;;  %v881_v59 = vpack.c.bf16 %v875_v57, %v874_v56 }
0x132f   :  { %1030 = vmatmul.msk.bf16.vlgmr.msra.gmra.mxu3 %vm272_vm2, %v882_v58 }
0x1333   :  { %1094 = vrot.lane.b32.xlu1 %v1093_v60, %s1174_s3 }
0x139d   :  { %v836_v61 = vpop.permute.xlu1 %835 }
0x139e   :  { %v838_v62 = vmul.f32 %v836_v61, %v819_v45 }
0x13a0   :  { %v1098_v63 = vpack.i.bf16 %v838_v62, %v1411_v11 }
0x13a2   :  { %1099 = vrot.lane.b32.xlu2 %v1098_v63, %s1174_s3 }
0x13a5   :  { %v1095_v47 = vpop.permute.xlu1 %1094 }
0x13a6   :  { %v1097_v25 = vunpack.i.h.bf16 %v1095_v47  ;;  %v1096_v51 = vunpack.i.l.bf16 %v1095_v47 }
0x13b2   :  { %v935_v2 = vpop.f32.mrf.mxu3 }
0x13b3   :  { %v936_v15 = vadd.f32 %v1105_v0, %v935_v2 }
0x13b5   :  { %949 = vst [vmem:[%s1485_s7 + $0x20] sm:$0xff] %v936_v15 }
0x13ba   :  { %v937_v3 = vpop.f32.mrf.mxu3 }
0x13bb   :  { %v938_v18 = vadd.f32 %v1105_v0, %v937_v3 }
0x13bd   :  { %950 = vst [vmem:[%s1485_s7 + $0x28] sm:$0xff] %v938_v18 }
0x13fc   :  { %v1100_v53 = vpop.permute.xlu2 %1099 }
0x13fd   :  { %v1102_v4 = vunpack.i.h.bf16 %v1100_v53  ;;  %v1101_v49 = vunpack.i.l.bf16 %v1100_v53 }
0x13ff   :  { %v872_v5 = vsel %vm871_vm6, %v1096_v51, %v1102_v4  ;;  %v873_v6 = vsel %vm871_vm6, %v1097_v25, %v1101_v49  ;;  %v878_v7 = vsel %vm871_vm6, %v1101_v49, %v1097_v25  ;;  %v879_v8 = vsel %vm871_vm6, %v1102_v4, %v1096_v51 }
0x1400   :  { %v880_v9 = vpack.c.bf16 %v873_v6, %v872_v5  ;;  %v883_v10 = vpack.c.bf16 %v879_v8, %v878_v7 }
0x1402   :  { %1028 = vmatmul.msk.bf16.vlgmr.msra.gmra.mxu0 %vm272_vm2, %v880_v9  ;;  %1031 = vmatmul.msk.bf16.gmra.mxu3 %vm272_vm2, %v883_v10 }
0x1412   :  { %1029 = vmatmul.msk.bf16.gmra.mxu0 %vm272_vm2, %v881_v59 }
0x147f   :  { %v925_v11 = vpop.f32.mrf.mxu0 }
0x1480   :  { %v926_v12 = vadd.f32 %v1105_v0, %v925_v11 }
0x1482   :  { %945 = vst [vmem:[%s1485_s7] sm:$0xff] %v926_v12 }
0x1485   :  { %v940_v14 = vpop.f32.mrf.mxu3 }
0x1486   :  { %v941_v17 = vadd.f32 %v1105_v0, %v940_v14 }
0x1487   :  { %v927_v19 = vpop.f32.mrf.mxu0 }
0x1488   :  { %951 = vst [vmem:[%s1485_s7 + $0x30] sm:$0xff] %v941_v17  ;;  %v928_v20 = vadd.f32 %v1105_v0, %v927_v19 }
0x148a   :  { %946 = vst [vmem:[%s1485_s7 + $0x8] sm:$0xff] %v928_v20 }
0x148d   :  { %v942_v21 = vpop.f32.mrf.mxu3 }
0x148e   :  { %v943_v22 = vadd.f32 %v1105_v0, %v942_v21 }
0x148f   :  { %v930_v23 = vpop.f32.mrf.mxu0 }
0x1490   :  { %952 = vst [vmem:[%s1485_s7 + $0x38] sm:$0xff] %v943_v22  ;;  %v931_v24 = vadd.f32 %v1105_v0, %v930_v23 }
0x1492   :  { %947 = vst [vmem:[%s1485_s7 + $0x10] sm:$0xff] %v931_v24 }
0x1497   :  { %v932_v26 = vpop.f32.mrf.mxu0 }
0x1498   :  { %v933_v27 = vadd.f32 %v1105_v0, %v932_v26 }
0x149a   :  { %948 = vst [vmem:[%s1485_s7 + $0x18] sm:$0xff] %v933_v27 }

</bundles_post_ra>
